<compile_context>
chip_gen: v7x
topology: tpu7x:2x2x1
jax: 0.10.0
libtpu: 0.0.40
codegen_flags: <defaults>
</compile_context>

<pallas_src>
import math

import jax
import jax.numpy as jnp
from jax import lax
from jax.experimental import pallas as pl
from jax.experimental.pallas import tpu as pltpu

EPS = 1e-6

# Tile-footprint budget (double-buffered inputs+output), conservative enough
# for v7x's 64 MiB physical VMEM while leaving headroom for scratch.
_TILE_VMEM_BUDGET = 28 * 1024 * 1024
_VMEM_LIMIT_BYTES = 48 * 1024 * 1024
# Whole problems smaller than this run as one fused grid step.
_FUSED_BYTES_LIMIT = 8 * 1024 * 1024


# ----------------------------- kernels --------------------------------------

def _cosine_affinity_tile_kernel(a1_ref, x_ref, a2_ref, y_ref, o_ref):
    """One (batch, N-tile, M-tile) grid step. Blocks (1,TN,d),(1,TM,d) -> (1,TN,TM)."""
    x = a1_ref[0] * x_ref[0]          # (TN, d)
    y = a2_ref[0] * y_ref[0]          # (TM, d)

    # Contract the last dim of both operands -> MXU, no explicit y.T relayout.
    num = lax.dot_general(
        x, y,
        dimension_numbers=(((1,), (1,)), ((), ())),
        preferred_element_type=jnp.float32)               # (TN, TM)

    # clamp_min(eps) on the squared norms (matches torch), then EUP rsqrt and
    # two cheap VPU multiplies instead of two full (TN,TM) divisions.
    inv_x = lax.rsqrt(jnp.maximum(jnp.sum(x * x, axis=-1, keepdims=True), EPS))  # (TN, 1)
    inv_y = lax.rsqrt(jnp.maximum(jnp.sum(y * y, axis=-1, keepdims=True), EPS))  # (TM, 1)

    o_ref[0] = (num * inv_x * inv_y.T).astype(o_ref.dtype)


def _cosine_affinity_fused_kernel(a1_ref, x_ref, a2_ref, y_ref, o_ref):
    """Whole problem (all batches) in one grid step — for small shapes."""
    x = a1_ref[...] * x_ref[...]      # (B, N, d)
    y = a2_ref[...] * y_ref[...]      # (B, M, d)

    num = jnp.einsum("bnd,bmd->bnm", x, y, preferred_element_type=jnp.float32)

    inv_x = lax.rsqrt(jnp.maximum(jnp.sum(x * x, axis=-1, keepdims=True), EPS))  # (B, N, 1)
    inv_y = lax.rsqrt(jnp.maximum(jnp.sum(y * y, axis=-1, keepdims=True), EPS))  # (B, M, 1)

    o_ref[...] = (num * inv_x * jnp.swapaxes(inv_y, -1, -2)).astype(o_ref.dtype)


# --------------------------- tile selection ----------------------------------

def _pick_tile(dim, target, granule):
    """Largest multiple of `granule` that divides `dim` and is <= target,
    else the full extent (full dims always satisfy the (8,128) rule)."""
    if dim <= target:
        return dim
    t = (target // granule) * granule
    while t >= granule:
        if dim % t == 0:
            return t
        t -= granule
    return dim


def _choose_tiles(N, M, d, dtype_bytes=4, budget=_TILE_VMEM_BUDGET):
    """Pick TN/TM so the double-buffered per-step footprint fits the budget."""
    target = 512
    while target >= 128:
        tn = _pick_tile(N, target, 8)     # sublane granule
        tm = _pick_tile(M, target, 128)   # lane granule (lane-dense output)
        step_bytes = 2 * (2 * tn * d + 2 * tm * d + tn * tm) * dtype_bytes
        if step_bytes <= budget:
            return tn, tm
        target //= 2
    # TODO(synk): for very large d add a reduction grid axis over d with a VMEM
    # accumulator instead of shrinking TN/TM further.
    return _pick_tile(N, 128, 8), _pick_tile(M, 128, 128)


# ------------------------------ wrapper ---------------------------------------

def cosine_affinity(A1, X, A2, Y):
    """X, A1: (B, N, d); Y, A2: (B, M, d) -> (B, N, M)."""
    B, N, d = X.shape
    _, M, _ = Y.shape
    assert Y.shape == (B, M, d) and A1.shape == X.shape and A2.shape == Y.shape

    total_bytes = 4 * (2 * B * N * d + 2 * B * M * d + B * N * M)

    if total_bytes <= _FUSED_BYTES_LIMIT:
        # Small problem: fold all batches into a single grid step (amortizes the
        # per-step pipeline overhead; avoids B tiny lane-sparse stores).
        return pl.pallas_call(
            _cosine_affinity_fused_kernel,
            out_shape=jax.ShapeDtypeStruct((B, N, M), jnp.float32),
            grid_spec=pltpu.PrefetchScalarGridSpec(
                num_scalar_prefetch=0,
                grid=(1,),
                in_specs=[
                    pl.BlockSpec((B, N, d), lambda i: (0, 0, 0)),
                    pl.BlockSpec((B, N, d), lambda i: (0, 0, 0)),
                    pl.BlockSpec((B, M, d), lambda i: (0, 0, 0)),
                    pl.BlockSpec((B, M, d), lambda i: (0, 0, 0)),
                ],
                out_specs=pl.BlockSpec((B, N, M), lambda i: (0, 0, 0)),
            ),
            compiler_params=pltpu.CompilerParams(
                dimension_semantics=("arbitrary",),
                vmem_limit_bytes=_VMEM_LIMIT_BYTES,
            ),
        )(A1, X, A2, Y)

    # Large problem: tile N and M, keep the full feature dim per tile.
    tn, tm = _choose_tiles(N, M, d)
    grid = (B, N // tn, M // tm)

    return pl.pallas_call(
        _cosine_affinity_tile_kernel,
        out_shape=jax.ShapeDtypeStruct((B, N, M), jnp.float32),
        grid_spec=pltpu.PrefetchScalarGridSpec(
            num_scalar_prefetch=0,
            grid=grid,
            in_specs=[
                pl.BlockSpec((1, tn, d), lambda b, i, j: (b, i, 0)),  # A1
                pl.BlockSpec((1, tn, d), lambda b, i, j: (b, i, 0)),  # X
                pl.BlockSpec((1, tm, d), lambda b, i, j: (b, j, 0)),  # A2
                pl.BlockSpec((1, tm, d), lambda b, i, j: (b, j, 0)),  # Y
            ],
            out_specs=pl.BlockSpec((1, tn, tm), lambda b, i, j: (b, i, j)),
        ),
        compiler_params=pltpu.CompilerParams(
            dimension_semantics=("parallel", "parallel", "parallel"),
            vmem_limit_bytes=_VMEM_LIMIT_BYTES,
        ),
    )(A1, X, A2, Y)


# ----------------------------- reference --------------------------------------

def cosine_affinity_reference(A1, X, A2, Y):
    X_ = A1 * X
    Y_ = A2 * Y
    num = jnp.einsum("bnd,bmd->bnm", X_, Y_)
    xn = jnp.sqrt(jnp.maximum(jnp.sum(X_ * X_, axis=-1), EPS))  # (B, N)
    yn = jnp.sqrt(jnp.maximum(jnp.sum(Y_ * Y_, axis=-1), EPS))  # (B, M)
    return num / xn[:, :, None] / yn[:, None, :]


if __name__ == "__main__":
    B, N, M, d = 2, 8, 8, 32

    key = jax.random.PRNGKey(0)
    kx, ky, ka1, ka2 = jax.random.split(key, 4)

    X = jax.random.normal(kx, (B, N, d), dtype=jnp.float32)
    Y = jax.random.normal(ky, (B, M, d), dtype=jnp.float32)

    # Deterministic parameter init matching the module: ones + U(-stdv, stdv).
    stdv = 1.0 / math.sqrt(d)
    A1 = jnp.ones((B, N, d), jnp.float32) + jax.random.uniform(
        ka1, (B, N, d), jnp.float32, minval=-stdv, maxval=stdv)
    A2 = jnp.ones((B, M, d), jnp.float32) + jax.random.uniform(
        ka2, (B, M, d), jnp.float32, minval=-stdv, maxval=stdv)

    out = cosine_affinity(A1, X, A2, Y)
    out = jax.block_until_ready(out)

    ref = cosine_affinity_reference(A1, X, A2, Y)
    assert out.shape == (B, N, M)
    assert jnp.allclose(out, ref, atol=1e-5, rtol=1e-5), "mismatch vs reference"

    print("KERNEL_OK")
</pallas_src>

<mosaic_0001>
module attributes {stable_mosaic.version = 11 : i64} {
  func.func @_cosine_affinity_fused_kernel(%arg0: i32, %arg1: memref<2x8x32xf32, #tpu.memory_space<vmem>>, %arg2: memref<2x8x32xf32, #tpu.memory_space<vmem>>, %arg3: memref<2x8x32xf32, #tpu.memory_space<vmem>>, %arg4: memref<2x8x32xf32, #tpu.memory_space<vmem>>, %arg5: memref<2x8x8xf32, #tpu.memory_space<vmem>>) attributes {dimension_semantics = [#tpu.dimension_semantics<arbitrary>], iteration_bounds = array<i64: 1>, scalar_prefetch = 0 : i64, scratch_operands = 0 : i64, tpu.core_type = #tpu.core_type<tc>, window_params = [{pipeline_mode = #tpu.pipeline_mode<synchronous>, transform_indices = @transform_0, window_bounds = array<i64: 2, 8, 32>}, {pipeline_mode = #tpu.pipeline_mode<synchronous>, transform_indices = @transform_1, window_bounds = array<i64: 2, 8, 32>}, {pipeline_mode = #tpu.pipeline_mode<synchronous>, transform_indices = @transform_2, window_bounds = array<i64: 2, 8, 32>}, {pipeline_mode = #tpu.pipeline_mode<synchronous>, transform_indices = @transform_3, window_bounds = array<i64: 2, 8, 32>}, {pipeline_mode = #tpu.pipeline_mode<synchronous>, transform_indices = @transform_4, window_bounds = array<i64: 2, 8, 8>}]} {
    %c0 = arith.constant 0 : index
    %c0_0 = arith.constant 0 : index
    %c0_1 = arith.constant 0 : index
    %0 = vector.load %arg1[%c0, %c0_0, %c0_1] : memref<2x8x32xf32, #tpu.memory_space<vmem>>, vector<2x8x32xf32>
    %c0_2 = arith.constant 0 : index
    %c0_3 = arith.constant 0 : index
    %c0_4 = arith.constant 0 : index
    %1 = vector.load %arg2[%c0_2, %c0_3, %c0_4] : memref<2x8x32xf32, #tpu.memory_space<vmem>>, vector<2x8x32xf32>
    %2 = arith.mulf %0, %1 : vector<2x8x32xf32>
    %c0_5 = arith.constant 0 : index
    %c0_6 = arith.constant 0 : index
    %c0_7 = arith.constant 0 : index
    %3 = vector.load %arg3[%c0_5, %c0_6, %c0_7] : memref<2x8x32xf32, #tpu.memory_space<vmem>>, vector<2x8x32xf32>
    %c0_8 = arith.constant 0 : index
    %c0_9 = arith.constant 0 : index
    %c0_10 = arith.constant 0 : index
    %4 = vector.load %arg4[%c0_8, %c0_9, %c0_10] : memref<2x8x32xf32, #tpu.memory_space<vmem>>, vector<2x8x32xf32>
    %5 = arith.mulf %3, %4 : vector<2x8x32xf32>
    "tpu.trace_start"() <{level = 10 : i32, message = "bnd,bmd->bnm"}> : () -> ()
    %cst = arith.constant dense<0.000000e+00> : vector<2x8x8xf32>
    %6 = tpu.matmul %2, %5, %cst {dimension_numbers = #tpu.dot_dimension_numbers<[2], [2], [1], [1], [0, 0, 0, 1, 1, 1], [0], [0]>} : vector<2x8x32xf32>, vector<2x8x32xf32>, vector<2x8x8xf32> -> vector<2x8x8xf32>
    "tpu.trace_stop"() : () -> ()
    %7 = arith.mulf %2, %2 : vector<2x8x32xf32>
    %cst_11 = arith.constant dense<0.000000e+00> : vector<2x8xf32>
    %8 = vector.multi_reduction <add>, %7, %cst_11 [2] : vector<2x8x32xf32> to vector<2x8xf32>
    %9 = vector.shape_cast %8 : vector<2x8xf32> to vector<2x8x1xf32>
    %cst_12 = arith.constant 9.99999997E-7 : f32
    %10 = vector.broadcast %cst_12 : f32 to vector<2x8x1xf32>
    %11 = arith.maximumf %9, %10 : vector<2x8x1xf32>
    %12 = math.rsqrt %11 : vector<2x8x1xf32>
    %13 = arith.mulf %5, %5 : vector<2x8x32xf32>
    %cst_13 = arith.constant dense<0.000000e+00> : vector<2x8xf32>
    %14 = vector.multi_reduction <add>, %13, %cst_13 [2] : vector<2x8x32xf32> to vector<2x8xf32>
    %15 = vector.shape_cast %14 : vector<2x8xf32> to vector<2x8x1xf32>
    %cst_14 = arith.constant 9.99999997E-7 : f32
    %16 = vector.broadcast %cst_14 : f32 to vector<2x8x1xf32>
    %17 = arith.maximumf %15, %16 : vector<2x8x1xf32>
    %18 = math.rsqrt %17 : vector<2x8x1xf32>
    %19 = vector.broadcast %12 : vector<2x8x1xf32> to vector<2x8x8xf32>
    %20 = arith.mulf %6, %19 : vector<2x8x8xf32>
    %21 = tpu.transpose %18, [0, 2, 1] : vector<2x8x1xf32> -> vector<2x1x8xf32>
    %22 = vector.broadcast %21 : vector<2x1x8xf32> to vector<2x8x8xf32>
    %23 = arith.mulf %20, %22 : vector<2x8x8xf32>
    %c0_15 = arith.constant 0 : index
    %c0_16 = arith.constant 0 : index
    %c0_17 = arith.constant 0 : index
    %24 = vector.load %arg5[%c0_15, %c0_16, %c0_17] : memref<2x8x8xf32, #tpu.memory_space<vmem>>, vector<2x8x8xf32>
    tpu.vector_store %arg5[%c0_15, %c0_16, %c0_17], %23 {strides = array<i32>} : memref<2x8x8xf32, #tpu.memory_space<vmem>>, vector<2x8x8xf32>,
    return
  }
  func.func @transform_0(%arg0: i32) -> (i32, i32, i32) {
    %c0_i32 = arith.constant 0 : i32
    %c0_i32_0 = arith.constant 0 : i32
    %c0_i32_1 = arith.constant 0 : i32
    %c0_i32_2 = arith.constant 0 : i32
    return %c0_i32, %c0_i32_0, %c0_i32_1 : i32, i32, i32
  }
  func.func @transform_1(%arg0: i32) -> (i32, i32, i32) {
    %c0_i32 = arith.constant 0 : i32
    %c0_i32_0 = arith.constant 0 : i32
    %c0_i32_1 = arith.constant 0 : i32
    %c0_i32_2 = arith.constant 0 : i32
    return %c0_i32, %c0_i32_0, %c0_i32_1 : i32, i32, i32
  }
  func.func @transform_2(%arg0: i32) -> (i32, i32, i32) {
    %c0_i32 = arith.constant 0 : i32
    %c0_i32_0 = arith.constant 0 : i32
    %c0_i32_1 = arith.constant 0 : i32
    %c0_i32_2 = arith.constant 0 : i32
    return %c0_i32, %c0_i32_0, %c0_i32_1 : i32, i32, i32
  }
  func.func @transform_3(%arg0: i32) -> (i32, i32, i32) {
    %c0_i32 = arith.constant 0 : i32
    %c0_i32_0 = arith.constant 0 : i32
    %c0_i32_1 = arith.constant 0 : i32
    %c0_i32_2 = arith.constant 0 : i32
    return %c0_i32, %c0_i32_0, %c0_i32_1 : i32, i32, i32
  }
  func.func @transform_4(%arg0: i32) -> (i32, i32, i32) {
    %c0_i32 = arith.constant 0 : i32
    %c0_i32_0 = arith.constant 0 : i32
    %c0_i32_1 = arith.constant 0 : i32
    %c0_i32_2 = arith.constant 0 : i32
    return %c0_i32, %c0_i32_0, %c0_i32_1 : i32, i32, i32
  }
}

</mosaic_0001>

<bundles_post_ra>
// kernel: tpu_custom_call.1
= control target key start
LH: loop header
LB: loop body
LE: loop exit
PB: predicated region body
PF: predicated region fallthrough
CT: control target
= control target key end

     0   :  { %9 = vsyncpa [#allocation3], 0  ;;  %s644_s0 = inlined_call_operand.hbm [shape: f32[2,8,32], index: 0, kind: input, shape index: {}]   ;;  %s645_s1 = inlined_call_operand.hbm [shape: f32[2,8,32], index: 1, kind: input, shape index: {}]   ;;  %s646_s2 = inlined_call_operand.hbm [shape: f32[2,8,32], index: 2, kind: input, shape index: {}]   ;;  %s647_s3 = inlined_call_operand.hbm [shape: f32[2,8,32], index: 3, kind: input, shape index: {}]   ;;  %s648_s4 = inlined_call_operand.hbm [shape: f32[2,8,8], index: 4, kind: output, shape index: {}]  }
   0x1   :  { %10 = vsyncpa [#allocation6], 0 }
   0x2   :  { %11 = vsyncpa [#allocation9], 0 }
   0x3   :  { %12 = vsyncpa [#allocation4], 0  ;;  %s513_s15 = smov [#allocation5]   ;;  %s514_s17 = smov [#allocation2]  }
   0x4   :  { %s30_s16 = sshll.u32 %s513_s15, 4  ;;  %s18_s18 = sshll.u32 %s514_s17, 4  ;;  %s31_s16 = int_to_ptr.vmem [resolvable:$true] %s30_s16  ;;  %s547_s18 = int_to_ptr.vmem [resolvable:$true] %s18_s18 }
   0x5   :  { %s395_s21 = scalar_lea.hbm %s645_s1, 256 }
   0x6   :  { %p396_p0 = scmp.ne.s32.totalorder %s645_s1, %s395_s21  ;;  %p399_p1 = scmp.lt.u32.totalorder %s395_s21, %s645_s1 }
   0x8   :  { %p401_p2 = pnand %p399_p1, %p396_p0 }
   0xa   :  { %404 = shalt.err (!%p401_p2)
}
   0xb   :  { %s405_s26 = scalar_lea.vmem %s31_s16, 256  ;;  %p410_p4 = scmp.lt.s32.totalorder %s31_s16, %s31_s16 }
   0xc   :  { %p406_p3 = scmp.ne.s32.totalorder %s31_s16, %s405_s26  ;;  %p411_p5 = scmp.lt.s32.totalorder %s405_s26, %s405_s26 }
   0xe   :  { %p412_p6 = por %p411_p5, %p410_p4 }
  0x10   :  { %p413_p7 = pnand %p412_p6, %p406_p3 }
  0x12   :  { %416 = shalt.err (!%p413_p7)
}
  0x13   :  { %s515_s27 = smov 128   ;;  %s516_s28 = smov 8  }
  0x14   :  { %36 = dma.hbm_to_vmem [thread:$0]  %s645_s1, 256, %s31_s16, [#allocation6], %s515_s27, %s515_s27, %s516_s28  }
  0x15   :  { %s417_s7 = scalar_lea.hbm %s644_s0, 256 }
  0x16   :  { %p418_p8 = scmp.ne.s32.totalorder %s644_s0, %s417_s7  ;;  %p421_p9 = scmp.lt.u32.totalorder %s417_s7, %s644_s0 }
  0x18   :  { %p423_p10 = pnand %p421_p9, %p418_p8 }
  0x1a   :  { %426 = shalt.err (!%p423_p10)
}
  0x1b   :  { %s427_s12 = scalar_lea.vmem %s547_s18, 256  ;;  %p432_p12 = scmp.lt.s32.totalorder %s547_s18, %s547_s18 }
  0x1c   :  { %p428_p11 = scmp.ne.s32.totalorder %s547_s18, %s427_s12  ;;  %p433_p13 = scmp.lt.s32.totalorder %s427_s12, %s427_s12 }
  0x1e   :  { %p434_p0 = por %p433_p13, %p432_p12 }
  0x20   :  { %p435_p1 = pnand %p434_p0, %p428_p11 }
  0x22   :  { %438 = shalt.err (!%p435_p1)
}
  0x23   :  { %24 = dma.hbm_to_vmem [thread:$0]  %s644_s0, 256, %s547_s18, [#allocation3], %s515_s27, %s515_s27, %s516_s28  }
  0x24   :  { %s517_s14 = smov [#allocation7]   ;;  %s518_s16 = smov [#allocation8]  }
  0x25   :  { %s42_s15 = sshll.u32 %s517_s14, 4  ;;  %s54_s17 = sshll.u32 %s518_s16, 4  ;;  %s43_s15 = int_to_ptr.vmem [resolvable:$true] %s42_s15  ;;  %s584_s17 = int_to_ptr.vmem [resolvable:$true] %s54_s17 }
  0x26   :  { %s439_s21 = scalar_lea.hbm %s646_s2, 256 }
  0x27   :  { %p440_p2 = scmp.ne.s32.totalorder %s646_s2, %s439_s21  ;;  %p443_p3 = scmp.lt.u32.totalorder %s439_s21, %s646_s2 }
  0x29   :  { %p445_p4 = pnand %p443_p3, %p440_p2 }
  0x2b   :  { %448 = shalt.err (!%p445_p4)
}
  0x2c   :  { %s449_s0 = scalar_lea.vmem %s43_s15, 256  ;;  %p454_p6 = scmp.lt.s32.totalorder %s43_s15, %s43_s15 }
  0x2d   :  { %p450_p5 = scmp.ne.s32.totalorder %s43_s15, %s449_s0  ;;  %p455_p7 = scmp.lt.s32.totalorder %s449_s0, %s449_s0 }
  0x2f   :  { %p456_p8 = por %p455_p7, %p454_p6 }
  0x31   :  { %p457_p9 = pnand %p456_p8, %p450_p5 }
  0x33   :  { %460 = shalt.err (!%p457_p9)
}
  0x34   :  { %48 = dma.hbm_to_vmem [thread:$0]  %s646_s2, 256, %s43_s15, [#allocation6], %s515_s27, %s515_s27, %s516_s28  }
  0x35   :  { %s461_s5 = scalar_lea.hbm %s647_s3, 256 }
  0x36   :  { %p462_p10 = scmp.ne.s32.totalorder %s647_s3, %s461_s5  ;;  %p465_p11 = scmp.lt.u32.totalorder %s461_s5, %s647_s3 }
  0x38   :  { %p467_p12 = pnand %p465_p11, %p462_p10 }
  0x3a   :  { %470 = shalt.err (!%p467_p12)
}
  0x3b   :  { %s471_s10 = scalar_lea.vmem %s584_s17, 256  ;;  %p476_p0 = scmp.lt.s32.totalorder %s584_s17, %s584_s17 }
  0x3c   :  { %p472_p13 = scmp.ne.s32.totalorder %s584_s17, %s471_s10  ;;  %p477_p1 = scmp.lt.s32.totalorder %s471_s10, %s471_s10 }
  0x3e   :  { %p478_p2 = por %p477_p1, %p476_p0 }
  0x40   :  { %p479_p3 = pnand %p478_p2, %p472_p13 }
  0x42   :  { %482 = shalt.err (!%p479_p3)
}
  0x43   :  { %60 = dma.hbm_to_vmem [thread:$0]  %s647_s3, 256, %s584_s17, [#allocation9], %s515_s27, %s515_s27, %s516_s28  }
  0x44   :  { %505 = dma.done.wait [#allocation3], 256  }
  0x45   :  { %506 = vsyncadd [#allocation3], 4294967040 }
  0x46   :  { %507 = dma.done.wait [#allocation6], 512  }
  0x47   :  { %508 = vsyncadd [#allocation6], 4294966784 }
  0x48   :  { %509 = dma.done.wait [#allocation9], 256  }
  0x49   :  { %510 = vsyncadd [#allocation9], 4294967040  ;;  %v519_v0 = vmov 0.0   ;;  %vm520_vm0 = vmmov 0   ;;  %v79_v1 = vld [vmem:[#allocation7] sm:$0xff]  ;;  %v81_v2 = vld [vmem:[#allocation8] sm:$0xff]  ;;  %v328_v35 = vlaneseq }
  0x4a   :  { %368 = vmatprep.subr.mxu0 %v519_v0  ;;  %370 = vmatprep.mubr.msk.f32.mxu0 %vm520_vm0, %v519_v0  ;;  %v80_v3 = vld [vmem:[#allocation7 + $0x8] sm:$0xff]  ;;  %v83_v4 = vmul.f32 %v81_v2, %v79_v1  ;;  %v82_v5 = vld [vmem:[#allocation8 + $0x8] sm:$0xff]  ;;  %v73_v6 = vld [vmem:[#allocation2] sm:$0xff]  ;;  %vm85_vm1 = vcmask 261120   ;;  %vm338_vm2 = vcmask 64512   ;;  %s521_s3 = smov [#allocation10]  }
  0x4b   :  { %373 = vmatprep.subr.mxu1 %v519_v0  ;;  %375 = vmatprep.mubr.msk.f32.mxu1 %vm520_vm0, %v519_v0  ;;  %v75_v7 = vld [vmem:[#allocation5] sm:$0xff]  ;;  %v84_v8 = vmul.f32 %v82_v5, %v80_v3  ;;  %v74_v10 = vld [vmem:[#allocation2 + $0x8] sm:$0xff]  ;;  %v76_v11 = vld [vmem:[#allocation5 + $0x8] sm:$0xff]  ;;  %v329_v36 = vshrl.u32 %v328_v35, 7  ;;  %s346_s12 = sshll.u32 %s521_s3, 4  ;;  %s347_s12 = int_to_ptr.vmem [resolvable:$true] %s346_s12 }
  0x4c   :  { %v77_v9 = vmul.f32 %v75_v7, %v73_v6  ;;  %v250_v12 = vmul.f32 %v83_v4, %v83_v4  ;;  %369 = vmatpush3.xpose.msk.msra.mxu0 %vm85_vm1, %v83_v4  ;;  %v78_v13 = vmul.f32 %v76_v11, %v74_v10  ;;  %s483_s1 = scalar_lea.vmem %s347_s12, 256  ;;  %p488_p5 = scmp.lt.s32.totalorder %s347_s12, %s347_s12 }
  0x4d   :  { %v251_v14 = vmul.f32 %v84_v8, %v84_v8  ;;  %374 = vmatpush3.xpose.msk.msra.mxu1 %vm85_vm1, %v84_v8  ;;  %v330_v37 = vsub.s32 0, %v329_v36  ;;  %p484_p4 = scmp.ne.s32.totalorder %s347_s12, %s483_s1  ;;  %p489_p6 = scmp.lt.s32.totalorder %s483_s1, %s483_s1 }
  0x4e   :  { %v238_v15 = vmul.f32 %v77_v9, %v77_v9  ;;  %v252_v16 = vsel %vm85_vm1, %v250_v12, 0.0  ;;  %v239_v17 = vmul.f32 %v78_v13, %v78_v13 }
  0x4f   :  { %253 = vadd.xlane.f32.xlu0 %v252_v16  ;;  %371 = vmatmul.mubr.msk.f32.vlgmr.msra.gmra.mrb[0].mxu0 %vm85_vm1, %v77_v9  ;;  %v255_v19 = vsel %vm85_vm1, %v251_v14, 0.0  ;;  %p490_p7 = por %p489_p6, %p488_p5 }
  0x50   :  { %v240_v18 = vsel %vm85_vm1, %v238_v15, 0.0  ;;  %376 = vmatmul.mubr.msk.f32.vlgmr.msra.gmra.mrb[0].mxu1 %vm85_vm1, %v78_v13  ;;  %v243_v20 = vsel %vm85_vm1, %v239_v17, 0.0 }
  0x51   :  { %241 = vadd.xlane.f32.xlu1 %v240_v18  ;;  %p491_p8 = pnand %p490_p7, %p484_p4 }
  0x53   :  { %256 = vadd.xlane.f32.xlu0 %v255_v19 }
  0x55   :  { %244 = vadd.xlane.f32.xlu1 %v243_v20 }
  0xdc   :  { %v254_v21 = vpop.xlane.xlu0 %253 }
  0xdd   :  { %v258_v22 = vmax.f32 %v254_v21, 1e-06 }
  0xde   :  { %v242_v31 = vpop.xlane.xlu1 %241 }
  0xdf   :  { %387 = vrsqrt.f32 %v258_v22  ;;  %v246_v32 = vmax.f32 %v242_v31, 1e-06 }
  0xe0   :  { %v257_v23 = vpop.xlane.xlu0 %256 }
  0xe1   :  { %v259_v24 = vmax.f32 %v257_v23, 1e-06 }
  0xe2   :  { %v245_v33 = vpop.xlane.xlu1 %244 }
  0xe3   :  { %389 = vrsqrt.f32 %v259_v24  ;;  %v247_v34 = vmax.f32 %v245_v33, 1e-06 }
  0xe4   :  { %391 = vrsqrt.f32 %v246_v32 }
  0xe5   :  { %393 = vrsqrt.f32 %v247_v34 }
  0xe9   :  { %v388_v25 = vpop.eup %387 }
  0xea   :  { %264 = vxpose.xlu0.b32.start.end [1/1] (short) (narrow) %v388_v25, 8 }
  0xed   :  { %v390_v26 = vpop.eup %389 }
  0xee   :  { %296 = vxpose.xlu1.b32.start.end [1/1] (short) (narrow) %v390_v26, 8  ;;  %v392_v38 = vpop.eup %391 }
  0xef   :  { %v394_v42 = vpop.eup %393 }
 0x122   :  { %v158_v27 = vpop.f32.mrb[0].mxu0 }
 0x123   :  { %v234_v28 = vpop.f32.mrb[0].mxu1  ;;  %v372_v29 = vpop.f32.mrb[1].mxu0  ;;  %v262_v40 = vmul.f32 %v392_v38, %v158_v27 }
 0x124   :  { %v377_v30 = vpop.f32.mrb[1].mxu1  ;;  %v263_v45 = vmul.f32 %v394_v42, %v234_v28 }
 0x16a   :  { %v280_v39 = vpop.trf.xlu0 }
 0x16b   :  { %v331_v41 = vrot.slane %v280_v39, %v330_v37 }
 0x16d   :  { %v336_v43 = vmul.f32 %v331_v41, %v262_v40 }
 0x16e   :  { %v312_v44 = vpop.trf.xlu1 }
 0x16f   :  { %v335_v46 = vrot.slane %v312_v44, %v330_v37  ;;  %339 = vst.msk [vmem:[#allocation10] sm:$0xff] %vm338_vm2, %v336_v43 }
 0x171   :  { %v337_v47 = vmul.f32 %v335_v46, %v263_v45 }
 0x173   :  { %340 = vst.msk [vmem:[#allocation10 + $0x8] sm:$0xff] %vm338_vm2, %v337_v47 }
 0x174   :  { %494 = shalt.err (!%p491_p8)
}
 0x175   :  { %s495_s15 = scalar_lea.hbm %s648_s4, 256 }
 0x176   :  { %p496_p9 = scmp.ne.s32.totalorder %s648_s4, %s495_s15  ;;  %p499_p10 = scmp.lt.u32.totalorder %s495_s15, %s648_s4 }
 0x178   :  { %p501_p11 = pnand %p499_p10, %p496_p9 }
 0x17a   :  { %504 = shalt.err (!%p501_p11)
}
 0x17b   :  { %352 = dma.vmem_to_hbm [thread:$0]  %s347_s12, 256, %s648_s4, [#allocation4], %s515_s27, %s515_s27, %s516_s28  }
 0x17c   :  { %511 = dma.done.wait [#allocation4], 256  }
 0x17d   :  { %512 = vsyncadd [#allocation4], 4294967040 }
 0x17e   :  { %356 = vsyncpa [#allocation3], 1 }
 0x17f   :  { %357 = vsyncpa [#allocation6], 1 }
 0x180   :  { %358 = vsyncpa [#allocation9], 1 }
 0x181   :  { %359 = vsyncpa [#allocation4], 1 }

</bundles_post_ra>
